<compile_context>
chip_gen: v7x
topology: tpu7x:2x2x1
jax: 0.10.0
libtpu: 0.0.40
codegen_flags: <defaults>
</compile_context>

<pallas_src>
import math
import functools

import jax
import jax.numpy as jnp
from jax.experimental import pallas as pl
from jax.experimental.pallas import tpu as pltpu


# ----------------------------------------------------------------------------
# Reference pe table (same construction as the PyTorch __init__) — used only
# for the correctness check in __main__.
# ----------------------------------------------------------------------------
def make_pe_table(d_model: int, max_len: int) -> jnp.ndarray:
    position = jnp.arange(0, max_len, dtype=jnp.float32)[:, None]
    div_term = jnp.exp(jnp.arange(0, d_model, 2, dtype=jnp.float32)
                       * (-math.log(10000.0) / d_model))
    pe = jnp.zeros((max_len, d_model), dtype=jnp.float32)
    pe = pe.at[:, 0::2].set(jnp.sin(position * div_term))
    pe = pe.at[:, 1::2].set(jnp.cos(position * div_term))
    return pe


# ----------------------------------------------------------------------------
# Kernels
# ----------------------------------------------------------------------------
def _pe_block(block_shape, d_model, dtype):
    """Sinusoid block for the current (row_block, lane_block) grid position.

    The 2-D slab element (s, b*D + d) needs pe[s, d]; d = lane % d_model.
    """
    T, L = block_shape
    row0 = pl.program_id(0) * T
    col0 = pl.program_id(1) * L
    pos = (row0 + jax.lax.broadcasted_iota(jnp.int32, (T, L), 0)).astype(jnp.float32)
    lane = col0 + jax.lax.broadcasted_iota(jnp.int32, (T, L), 1)
    d_idx = lane % d_model                         # column within the embed dim
    is_odd = jnp.bitwise_and(d_idx, 1)             # 0 -> sin, 1 -> cos
    pair = (d_idx - is_odd).astype(jnp.float32)    # 2*i
    angle = pos * jnp.exp(pair * jnp.float32(-math.log(10000.0) / d_model))
    pe = jnp.where(is_odd == 0, jnp.sin(angle), jnp.cos(angle))
    return pe.astype(dtype)


def _pe_add_kernel(x_ref, o_ref, *, d_model):
    # eval mode: dropout is identity -> plain x + pe
    o_ref[...] = x_ref[...] + _pe_block(x_ref.shape, d_model, x_ref.dtype)


def _pe_add_dropout_kernel(x_ref, bits_ref, o_ref, *, d_model, keep_threshold, scale):
    # train mode: x + pe followed by inverted dropout (keep iff bits >= thresh)
    y = x_ref[...] + _pe_block(x_ref.shape, d_model, x_ref.dtype)
    keep = bits_ref[...] >= jnp.uint32(keep_threshold)
    o_ref[...] = jnp.where(keep, y * jnp.asarray(scale, y.dtype),
                           jnp.zeros((), y.dtype))


# ----------------------------------------------------------------------------
# Wrapper
# ----------------------------------------------------------------------------
def _round_up(v, m):
    return (v + m - 1) // m * m


def _round_down_clamped(v, m):
    return max(m, v // m * m)


def _chip_budgets():
    """(target_block_bytes, vmem_limit_bytes), sized per TPU generation."""
    try:
        vmem_cap = pltpu.get_tpu_info().vmem_capacity_bytes
    except Exception:
        vmem_cap = 64 * 1024 * 1024               # assume smallest (v7x-like)
    if vmem_cap >= 100 * 1024 * 1024:             # v5e / v6e: 128 MiB VMEM
        return 6 << 20, 96 * 1024 * 1024
    return 2 << 20, 48 * 1024 * 1024              # v7x: 64 MiB physical per TC


def positional_encoding(x, *, dropout_p=0.1, train=False, rng_key=None,
                        target_block_bytes=None, vmem_limit_bytes=None):
    """PositionalEncoding.forward: x [S, B, D] -> dropout(x + pe[:S])."""
    S, B, D = x.shape
    BD = B * D
    itemsize = jnp.dtype(x.dtype).itemsize

    if target_block_bytes is None or vmem_limit_bytes is None:
        tb, vl = _chip_budgets()
        target_block_bytes = target_block_bytes or tb
        vmem_limit_bytes = vmem_limit_bytes or vl

    # Lane-dense 2-D slab; element (s, b*D + d) == x[s, b, d].
    x2 = x.reshape(S, BD)

    # ---- block sizing ------------------------------------------------------
    sub = {4: 8, 2: 16, 1: 32}.get(itemsize, 8)   # sublane multiple per dtype
    lane_tile = BD
    # Tile the lane axis when a single `sub`-row block would blow the budget
    # (guards v7x's small VMEM for very wide B*D); keep 128-lane multiples.
    if BD % 128 == 0 and BD * itemsize * sub > target_block_bytes:
        lane_tile = max(128, (target_block_bytes // (sub * itemsize)) // 128 * 128)
        lane_tile = min(lane_tile, BD)
    row_bytes = max(lane_tile * itemsize, 1)
    seq_tile = _round_down_clamped(target_block_bytes // row_bytes, sub)
    seq_tile = min(seq_tile, _round_up(S, sub))
    # Keep the row grid at >= ~8 blocks when S allows (feeds both v7x TCs).
    seq_tile = min(seq_tile, max(sub, _round_up(pl.cdiv(S, 8), sub)))

    grid = (pl.cdiv(S, seq_tile), pl.cdiv(BD, lane_tile))   # ragged tails OK
    block = pl.BlockSpec((seq_tile, lane_tile), lambda i, j: (i, j))
    out_shape = jax.ShapeDtypeStruct((S, BD), x.dtype)

    compiler_params = pltpu.CompilerParams(
        dimension_semantics=("parallel", "parallel"),
        vmem_limit_bytes=vmem_limit_bytes,
    )

    if (not train) or dropout_p == 0.0:
        # nn.Dropout is identity in eval mode.
        kernel = functools.partial(_pe_add_kernel, d_model=D)
        out2 = pl.pallas_call(
            kernel,
            out_shape=out_shape,
            grid_spec=pltpu.PrefetchScalarGridSpec(
                num_scalar_prefetch=0, grid=grid,
                in_specs=[block], out_specs=block),
            compiler_params=compiler_params,
            input_output_aliases={0: 0},          # write result in place of x
        )(x2)
    else:
        if dropout_p >= 1.0:                      # torch: p=1 zeroes everything
            return jnp.zeros_like(x)
        if rng_key is None:
            rng_key = jax.random.PRNGKey(0)
        # Bits drawn once in the wrapper -> pattern independent of tiling and
        # portable (no hardware-PRNG primitives in the kernel).
        # TODO(synk): on real TPU this stream could come from the in-kernel HW
        #             PRNG to save the extra uint32 read per element.
        bits = jax.random.bits(rng_key, (S, BD), dtype=jnp.uint32)
        threshold = min(int(round(dropout_p * 2.0 ** 32)), 2 ** 32 - 1)
        kernel = functools.partial(_pe_add_dropout_kernel, d_model=D,
                                   keep_threshold=threshold,
                                   scale=1.0 / (1.0 - dropout_p))
        out2 = pl.pallas_call(
            kernel,
            out_shape=out_shape,
            grid_spec=pltpu.PrefetchScalarGridSpec(
                num_scalar_prefetch=0, grid=grid,
                in_specs=[block, block], out_specs=block),
            compiler_params=compiler_params,
            input_output_aliases={0: 0},
        )(x2, bits)

    return out2.reshape(S, B, D)


# ----------------------------------------------------------------------------
if __name__ == "__main__":
    # d_model = 128 so the lane width B*D = 256 is a multiple of 128
    S, B, D = 16, 2, 128

    key = jax.random.PRNGKey(0)
    kx, kd = jax.random.split(key)
    x = jax.random.normal(kx, (S, B, D), dtype=jnp.float32)

    # eval-mode forward (dropout = identity): deterministic, check vs reference
    out = positional_encoding(x, dropout_p=0.1, train=False)
    out = jax.block_until_ready(out)

    ref = x + make_pe_table(D, S)[:, None, :]
    assert out.shape == (S, B, D)
    assert jnp.allclose(out, ref, atol=1e-4, rtol=1e-4), "mismatch vs pure-JAX reference"

    # also exercise the train-mode (fused dropout) path once
    out_train = positional_encoding(x, dropout_p=0.1, train=True, rng_key=kd)
    out_train = jax.block_until_ready(out_train)
    assert out_train.shape == (S, B, D)
    assert bool(jnp.all(jnp.isfinite(out_train)))

    print("KERNEL_OK")
</pallas_src>

<mosaic_0001>
module attributes {stable_mosaic.version = 11 : i64} {
  func.func @_pe_add_kernel(%arg0: i32, %arg1: i32, %arg2: memref<8x256xf32, #tpu.memory_space<vmem>>, %arg3: memref<8x256xf32, #tpu.memory_space<vmem>>) attributes {dimension_semantics = [#tpu.dimension_semantics<parallel>, #tpu.dimension_semantics<parallel>], iteration_bounds = array<i64: 2, 1>, scalar_prefetch = 0 : i64, scratch_operands = 0 : i64, tpu.core_type = #tpu.core_type<tc>, window_params = [{transform_indices = @transform_0, window_bounds = array<i64: 8, 256>}, {transform_indices = @transform_1, window_bounds = array<i64: 8, 256>}]} {
    %c0 = arith.constant 0 : index
    %c0_0 = arith.constant 0 : index
    %0 = vector.load %arg2[%c0, %c0_0] : memref<8x256xf32, #tpu.memory_space<vmem>>, vector<8x256xf32>
    %c8_i32 = arith.constant 8 : i32
    %1 = arith.muli %arg0, %c8_i32 : i32
    %c256_i32 = arith.constant 256 : i32
    %2 = arith.muli %arg1, %c256_i32 : i32
    %3 = tpu.iota {dimensions = array<i32: 0>} : vector<8x256xi32>
    %4 = vector.broadcast %1 : i32 to vector<8x256xi32>
    %5 = arith.addi %4, %3 : vector<8x256xi32>
    %6 = arith.sitofp %5 : vector<8x256xi32> to vector<8x256xf32>
    %7 = tpu.iota {dimensions = array<i32: 1>} : vector<8x256xi32>
    %8 = vector.broadcast %2 : i32 to vector<8x256xi32>
    %9 = arith.addi %8, %7 : vector<8x256xi32>
    %c128_i32 = arith.constant 128 : i32
    %c0_i32 = arith.constant 0 : i32
    %10 = arith.cmpi eq, %c128_i32, %c0_i32 : i32
    %c1_i32 = arith.constant 1 : i32
    %11 = arith.select %10, %c1_i32, %c128_i32 : i32
    %12 = vector.broadcast %11 : i32 to vector<8x256xi32>
    %13 = arith.remsi %9, %12 : vector<8x256xi32>
    %c0_i32_1 = arith.constant 0 : i32
    %14 = vector.broadcast %c0_i32_1 : i32 to vector<8x256xi32>
    %15 = arith.cmpi ne, %13, %14 : vector<8x256xi32>
    %c0_i32_2 = arith.constant 0 : i32
    %16 = vector.broadcast %c0_i32_2 : i32 to vector<8x256xi32>
    %17 = arith.cmpi slt, %13, %16 : vector<8x256xi32>
    %c0_i32_3 = arith.constant 0 : i32
    %18 = arith.cmpi slt, %11, %c0_i32_3 : i32
    %19 = vector.broadcast %18 : i1 to vector<8x256xi1>
    %20 = vector.broadcast %19 : vector<8x256xi1> to vector<8x256xi1>
    %21 = arith.xori %17, %20 : vector<8x256xi1>
    %22 = arith.andi %21, %15 : vector<8x256xi1>
    %23 = vector.broadcast %11 : i32 to vector<8x256xi32>
    %24 = arith.addi %13, %23 : vector<8x256xi32>
    %25 = arith.select %22, %24, %13 : vector<8x256xi1>, vector<8x256xi32>
    %c1_i32_4 = arith.constant 1 : i32
    %26 = vector.broadcast %c1_i32_4 : i32 to vector<8x256xi32>
    %27 = arith.andi %25, %26 : vector<8x256xi32>
    %28 = arith.subi %25, %27 : vector<8x256xi32>
    %29 = arith.sitofp %28 : vector<8x256xi32> to vector<8x256xf32>
    %cst = arith.constant -0.0719557852 : f32
    %30 = vector.broadcast %cst : f32 to vector<8x256xf32>
    %31 = arith.mulf %29, %30 : vector<8x256xf32>
    %32 = math.exp %31 : vector<8x256xf32>
    %33 = arith.mulf %6, %32 : vector<8x256xf32>
    %c0_i32_5 = arith.constant 0 : i32
    %34 = vector.broadcast %c0_i32_5 : i32 to vector<8x256xi32>
    %35 = arith.cmpi eq, %27, %34 : vector<8x256xi32>
    %36 = math.sin %33 : vector<8x256xf32>
    %37 = math.cos %33 : vector<8x256xf32>
    %38 = arith.select %35, %36, %37 : vector<8x256xi1>, vector<8x256xf32>
    %39 = arith.addf %0, %38 : vector<8x256xf32>
    %c0_6 = arith.constant 0 : index
    %c0_7 = arith.constant 0 : index
    %40 = vector.load %arg3[%c0_6, %c0_7] : memref<8x256xf32, #tpu.memory_space<vmem>>, vector<8x256xf32>
    tpu.vector_store %arg3[%c0_6, %c0_7], %39 {strides = array<i32>} : memref<8x256xf32, #tpu.memory_space<vmem>>, vector<8x256xf32>,
    return
  }
  func.func @transform_0(%arg0: i32, %arg1: i32) -> (i32, i32) {
    %c0_i32 = arith.constant 0 : i32
    return %arg0, %arg1 : i32, i32
  }
  func.func @transform_1(%arg0: i32, %arg1: i32) -> (i32, i32) {
    %c0_i32 = arith.constant 0 : i32
    return %arg0, %arg1 : i32, i32
  }
}

</mosaic_0001>

<bundles_post_ra>
// kernel: tpu_custom_call.1
= control target key start
LH: loop header
LB: loop body
LE: loop exit
PB: predicated region body
PF: predicated region fallthrough
CT: control target
= control target key end

     0   :  { %6 = vsyncpa [#allocation3], 0  ;;  %s1236_s0 = inlined_call_operand.hbm [shape: f32[16,256], index: 0, kind: input, shape index: {}, may-alias: {0,1}]   ;;  %s1237_s1 = inlined_call_operand.hbm [shape: f32[16,256], index: 1, kind: output, shape index: {}, may-alias: {0,1}]  }
   0x1   :  { %8 = vsyncpa [#allocation3 + $0x1], 0 }
   0x2   :  { %9 = vsyncpa [#allocation4], 0 }
   0x3   :  { %11 = vsyncpa [#allocation4 + $0x1], 0  ;;  %s983_s6 = smov 0   ;;  %s985_s7 = smov 0  }
   0x4   :  { %s987_s8 = smov 0   ;;  %s989_s9 = smov 0  }
   0x5   :  { %s991_s10 = smov 0   ;;  %s993_s11 = smov 0  }
   0x6 LB: > { %s729_s12 = sadd.s32 4294967295, %s963_s11   ;;  %s730_s13 = sadd.s32 4294967294, %s963_s11   ;;  %s963_s11 = sphi %s993_s11, %s17_s11   ;;  %s959_s10 = sphi %s991_s10, %s1253_s10   ;;  %s955_s9 = sphi %s989_s9, %s1252_s9   ;;  %s951_s8 = sphi %s987_s8, %s1251_s8   ;;  %s947_s7 = sphi %s985_s7, %s1250_s7   ;;  %s943_s6 = sphi %s983_s6, %s1249_s6  }
   0x7   : > { %s29_s14 = sadd.s32 1, %s959_s10  ;;  %s38_s15 = sadd.s32 1, %s951_s8 }
   0x8   : > { %p31_p0 = scmp.ge.s32.totalorder %s29_s14, 2  ;;  %p45_p1 = scmp.ne.s32.totalorder %s951_s8, %s947_s7 }
   0x9   : > { %p46_p2 = scmp.eq.s32.totalorder %s963_s11, 0  ;;  %p51_p3 = scmp.ne.s32.totalorder %s947_s7, %s943_s6 }
   0xa   : > { %s1255_s14 = smov (%p31_p0, %s29_s14), 0  ;;  %p52_p5 = scmp.eq.s32.totalorder %s729_s12, 0 }
   0xb   : > { %p1024_p4 = por %p46_p2, %p45_p1  ;;  %s33_s17 = ssub.s32 %s959_s10, %s1255_s14 }
   0xc   : > { %p77_p6 = scmp.eq.s32.totalorder %s729_s12, 1  ;;  %p36_p7 = scmp.eq.s32.totalorder %s33_s17, 0 }
   0xd   : > { %p1030_p8 = por %p52_p5, %p51_p3  ;;  %p83_p10 = scmp.eq.s32.totalorder %s730_s13, 1 }
   0xe   : > { %p1034_p9 = por %p77_p6, %p45_p1  ;;  %p783_p13 = scmp.lt.s32.totalorder %s963_s11, 2 }
   0xf   : > { %s1039_s20 = scalar_select %p36_p7, %s951_s8, %s38_s15  }
  0x10   : > { %s1241_s19 = scalar_select %p1034_p9, 1, 0 }
  0x11   : > { %p1041_p11 = por %p83_p10, %p51_p3  ;;  %s103_s22 = sand.u32 1, %s951_s8  }
  0x12   : > { %s733_s23 = sshll.u32 %s103_s22, 4  ;;  %s761_s24 = sshll.u32 %s959_s10, 8 }
  0x13   : > { %s1242_s21 = scalar_select %p1041_p11, 1, 0 }
  0x14   : > { %s1052_s27 = scalar_lea.hbm %s1236_s0, %s761_s24  ;;  %s107_s28 = scalar_lea.vmem [#allocation2], %s733_s23 }
  0x15   : > { %s117_s29 = sshll.u32 %s107_s28, 4  ;;  %p1058_p0 = pnand %p783_p13, %p1024_p4  ;;  %s1054_s29 = int_to_ptr.vmem [resolvable:$true] %s117_s29 }
  0x16   : > { %s104_s2 = scalar_lea.sflag [#allocation3], %s103_s22  ;;  %s851_s3 = scalar_lea.hbm %s1052_s27, 256 }
  0x17   : > { %p852_p3 = scmp.ne.s32.totalorder %s1052_s27, %s851_s3  ;;  %p853_p5 = pneg %p1058_p0 }
  0x18   : > { %s856_s12 = scalar_lea.hbm %s1236_s0, 512  ;;  %p857_p4 = scmp.lt.u32.totalorder %s1052_s27, %s1236_s0 }
  0x19   : > { %p854_p6 = pnand %p853_p5, %p852_p3  ;;  %p858_p10 = scmp.lt.u32.totalorder %s856_s12, %s851_s3 }
  0x1a   : > { %p860_p12 = scmp.lt.u32.totalorder %s851_s3, %s1052_s27 }
  0x1b   : > { %p855_p7 = pneg %p854_p6  ;;  %p859_p13 = por %p858_p10, %p857_p4 }
  0x1d   : > { %p861_p1 = por %p860_p12, %p859_p13 }
  0x1f   : > { %p862_p2 = pnand %p861_p1, %p855_p7 }
  0x21   : > { %865 = shalt.err (!%p862_p2)
}
  0x22   : > { %s866_s16 = scalar_lea.vmem %s1054_s29, 256  ;;  %s965_s17 = smov [#allocation2]  }
  0x23   : > { %p867_p3 = scmp.ne.s32.totalorder %s1054_s29, %s866_s16  ;;  %s871_s22 = sshll.u32 %s965_s17, 4  ;;  %s872_s22 = int_to_ptr.vmem [resolvable:$false] %s871_s22 }
  0x24   : > { %s873_s23 = scalar_lea.vmem %s872_s22, 512  ;;  %p874_p9 = scmp.lt.s32.totalorder %s1054_s29, %s872_s22 }
  0x25   : > { %p869_p6 = pnand %p867_p3, %p853_p5  ;;  %p875_p4 = scmp.lt.s32.totalorder %s873_s23, %s866_s16 }
  0x27   : > { %p870_p11 = pneg %p869_p6  ;;  %p876_p10 = por %p875_p4, %p874_p9 }
  0x29   : > { %p877_p12 = pnand %p876_p10, %p870_p11 }
  0x2b   : > { %880 = shalt.err (!%p877_p12)
}
  0x2c   : > { %778 = dma.hbm_to_vmem [thread:$0]  (!%p1058_p0), %s1052_s27, 256, %s1054_s29, %s104_s2  }
  0x2d   : > { %p1244_p1 = scmp.lt.s32.totalorder %s963_s11, 3  ;;  %p1245_p2 = scmp.ge.s32.totalorder %s963_s11, 1 }
  0x2f   : > { %p123_p5 = pnand %p1245_p2, %p1244_p1 }
  0x30   : > { %s1094_s24 = sand.u32 (!%p123_p5), 1, %s947_s7  }
  0x31   : > { %126 = sbr.rel (%p123_p5) target bundleno = 192 (0xc0), region = 24  ;;  %s737_s25 = sshll.u32 (!%p123_p5), %s1094_s24, 4 }
  0x32   : > { %s129_s26 = scalar_lea.sflag (!%p123_p5), [#allocation3], %s1094_s24  ;;  %s1100_s28 = scalar_lea.vmem (!%p123_p5), [#allocation2], %s737_s25 }
  0x38   : > { %934 = dma.done.wait (%p1030_p8), %s129_s26, 256  }
  0x39   : > { %936 = vsyncadd (%p1030_p8), %s129_s26, 4294967040  ;;  %v157_v0 = vlaneseq  ;;  %s739_s18 = sshll.u32 %s955_s9, 3  ;;  %v966_v40 = vmov 683565275   ;;  %v967_v42 = vmov 2475754826  }
  0x3a   : > { %v159_v13 = vstv %s739_s18  ;;  %v968_v44 = vmov 2131351028   ;;  %v969_v46 = vmov 2102212464   ;;  %v970_v48 = vmov 920167782  }
  0x3b   : > { %v1106_v1 = vand.u32 127, %v157_v0  ;;  %v158_v12 = vshrl.u32 %v157_v0, 7  ;;  %v971_v56 = vmov 1326507024   ;;  %s150_s27 = scalar_lea.vmem [#allocation5], %s737_s25  ;;  %s762_s29 = sshll.u32 %s955_s9, 8 }
  0x3c   : > { %s645_s30 = sshll.u32 %s150_s27, 4  ;;  %s1187_s4 = scalar_lea.hbm %s1237_s1, %s762_s29  ;;  %s1189_s30 = int_to_ptr.vmem [resolvable:$true] %s645_s30 }
  0x3d   : > { %v164_v2 = vadd.s32 128, %v1106_v1  ;;  %v192_v3 = vand.u32 1, %v1106_v1  ;;  %v160_v16 = vadd.s32 %v159_v13, %v158_v12  ;;  %s629_s5 = scalar_lea.sflag [#allocation4], %s1094_s24  ;;  %s881_s12 = scalar_lea.vmem %s1189_s30, 256 }
  0x3e   : > { %p882_p8 = scmp.ne.s32.totalorder %s1189_s30, %s881_s12  ;;  %p1246_p9 = scmp.ne.s32.totalorder %s1241_s19, 0 }
  0x3f   : > { %v179_v4 = vand.u32 127, %v164_v2  ;;  %v194_v5 = vsub.s32 %v1106_v1, %v192_v3  ;;  %v161_v17 = vcvt.s32.f32 %v160_v16  ;;  %s972_s9 = smov [#allocation5]  }
  0x40   : > { %p883_p11 = pnand %p882_p8, %p1246_p9  ;;  %s885_s13 = sshll.u32 %s972_s9, 4  ;;  %s886_s13 = int_to_ptr.vmem [resolvable:$false] %s885_s13 }
  0x41   : > { %v1113_v6 = vand.u32 1, %v179_v4  ;;  %v196_v7 = vcvt.s32.f32 %v194_v5  ;;  %s887_s15 = scalar_lea.vmem %s886_s13, 512  ;;  %p888_p7 = scmp.lt.s32.totalorder %s1189_s30, %s886_s13 }
  0x42   : > { %p884_p0 = pneg %p883_p11  ;;  %p889_p13 = scmp.lt.s32.totalorder %s887_s15, %s881_s12 }
  0x43   : > { %v195_v8 = vsub.s32 %v179_v4, %v1113_v6  ;;  %v198_v9 = vmul.f32 -0.071955785, %v196_v7 }
  0x44   : > { %p890_p3 = por %p889_p13, %p888_p7 }
  0x45   : > { %v197_v10 = vcvt.s32.f32 %v195_v8  ;;  %v200_v11 = vmul.f32 1.442695, %v198_v9 }
  0x46   : > { %p891_p6 = pnand %p890_p3, %p884_p0 }
  0x47   : > { %v199_v14 = vmul.f32 -0.071955785, %v197_v10  ;;  %839 = vpow2.f32 %v200_v11 }
  0x49   : > { %v202_v15 = vmul.f32 1.442695, %v199_v14 }
  0x4b   : > { %841 = vpow2.f32 %v202_v15 }
  0x51   : > { %v840_v18 = vpop.eup %839 }
  0x52   : > { %v1117_v19 = vmul.f32 %v840_v18, %v161_v17 }
  0x54   : > { %v208_v20 = vand.u32 2147483647, %v1117_v19  ;;  %v211_v21 = vand.u32 2139095040, %v1117_v19  ;;  %vm210_vm14 = vcmp.lt.s32.totalorder %v1117_v19, 0 }
  0x55   : > { %v842_v22 = vpop.eup %841 }
  0x56   : > { %v1121_v23 = vmul.f32 %v842_v22, %v161_v17  ;;  %v212_v24 = vshrl.u32 %v211_v21, 23  ;;  %v215_v25 = vand.u32 8388607, %v208_v20  ;;  %vm209_vm15 = vcmp.le.f32.partialorder %v208_v20, 0.7853982 }
  0x58   : > { %v740_v26 = vadd.s32 4294967169, %v212_v24  ;;  %v312_v27 = vand.u32 2147483647, %v1121_v23  ;;  %v315_v28 = vand.u32 2139095040, %v1121_v23  ;;  %v216_v30 = vor.u32 8388608, %v215_v25 }
  0x5a   : > { %v218_v29 = vadd.s32 1, %v740_v26  ;;  %v316_v31 = vshrl.u32 %v315_v28, 23  ;;  %v319_v34 = vand.u32 8388607, %v312_v27  ;;  %v1129_v37 = vshll.u32 %v216_v30, 8 }
  0x5c   : > { %vm219_vm0 = vcmp.gt.s32.totalorder %v218_v29, 0  ;;  %v744_v33 = vadd.s32 4294967169, %v316_v31  ;;  %v320_v50 = vor.u32 8388608, %v319_v34 }
  0x5d   : > { %v220_v32 = vsel %vm219_vm0, %v218_v29, 0  ;;  %vm314_vm0 = vcmp.lt.s32.totalorder %v1121_v23, 0 }
  0x5e   : > { %v221_v35 = vshrl.u32 %v220_v32, 5  ;;  %v222_v36 = vand.u32 31, %v220_v32  ;;  %v322_v38 = vadd.s32 1, %v744_v33  ;;  %v360_v17 = vshll.u32 %v320_v50, 8 }
  0x60   : > { %v223_v39 = vsub.s32 32, %v222_v36  ;;  %v225_v41 = vshll.u32 %v966_v40, %v222_v36  ;;  %v228_v43 = vshll.u32 %v967_v42, %v222_v36  ;;  %v231_v45 = vshll.u32 %v968_v44, %v222_v36 }
  0x61   : > { %v234_v47 = vshll.u32 %v969_v46, %v222_v36  ;;  %v237_v49 = vshll.u32 %v970_v48, %v222_v36  ;;  %vm240_vm1 = vcmp.lt.s32.totalorder %v221_v35, 1  ;;  %vm241_vm2 = vcmp.lt.s32.totalorder %v221_v35, 2 }
  0x62   : > { %v224_v51 = vshrl.u32 %v966_v40, %v223_v39  ;;  %v226_v52 = vshrl.u32 %v967_v42, %v223_v39  ;;  %v229_v53 = vshrl.u32 %v968_v44, %v223_v39  ;;  %v232_v54 = vshrl.u32 %v969_v46, %v223_v39 }
  0x63   : > { %v235_v55 = vshrl.u32 %v970_v48, %v223_v39  ;;  %v238_v57 = vshrl.u32 %v971_v56, %v223_v39  ;;  %vm243_vm3 = vcmp.lt.s32.totalorder %v221_v35, 4  ;;  %vm323_vm4 = vcmp.gt.s32.totalorder %v322_v38, 0 }
  0x64   : > { %v227_v58 = vor.u32 %v226_v52, %v225_v41  ;;  %v230_v59 = vor.u32 %v229_v53, %v228_v43  ;;  %v233_v60 = vor.u32 %v232_v54, %v231_v45  ;;  %vm242_vm5 = vcmp.lt.s32.totalorder %v221_v35, 3 }
  0x65   : > { %v236_v61 = vor.u32 %v235_v55, %v234_v47  ;;  %v239_v62 = vor.u32 %v238_v57, %v237_v49  ;;  %v324_v63 = vsel %vm323_vm4, %v322_v38, 0 }
  0x66   : > { %v244_v0 = vsel %vm240_vm1, %v224_v51, %v227_v58  ;;  %v245_v2 = vsel %vm243_vm3, %v233_v60, 2102212464  ;;  %v248_v4 = vsel %vm240_vm1, %v227_v58, %v230_v59  ;;  %v252_v5 = vsel %vm240_vm1, %v230_v59, %v233_v60 }
  0x67   : > { %v246_v7 = vsel %vm242_vm5, %v230_v59, %v245_v2  ;;  %v249_v8 = vsel %vm243_vm3, %v236_v61, 920167782  ;;  %v253_v9 = vsel %vm243_vm3, %v239_v62, 1326507024  ;;  %v325_v12 = vshrl.u32 %v324_v63, 5 }
  0x68   : > { %v250_v10 = vsel %vm242_vm5, %v233_v60, %v249_v8  ;;  %v254_v11 = vsel %vm242_vm5, %v236_v61, %v253_v9  ;;  %v326_v13 = vand.u32 31, %v324_v63  ;;  %v247_v14 = vsel %vm241_vm2, %v244_v0, %v246_v7 }
  0x69   : > { %v251_v15 = vsel %vm241_vm2, %v248_v4, %v250_v10  ;;  %v255_v16 = vsel %vm241_vm2, %v252_v5, %v254_v11  ;;  %v263_v30 = vmul.u32 %v1129_v37, %v247_v14  ;;  %vm344_vm6 = vcmp.lt.s32.totalorder %v325_v12, 1 }
  0x6a   : > { %v1138_v18 = vmul.u32.u64.low %v1129_v37, %v255_v16  ;;  %v1139_v21 = vmul.u32.u64.high %v1129_v37, %v255_v16, %v1138_v18  ;;  %v1142_v22 = vmul.u32.u64.low %v1129_v37, %v251_v15  ;;  %v1143_v24 = vmul.u32.u64.high %v1129_v37, %v251_v15, %v1142_v22 }
  0x6b   : > { %v327_v25 = vsub.s32 32, %v326_v13  ;;  %v329_v26 = vshll.u32 %v966_v40, %v326_v13  ;;  %v332_v28 = vshll.u32 %v967_v42, %v326_v13  ;;  %v335_v29 = vshll.u32 %v968_v44, %v326_v13 }
  0x6c   : > { %v338_v31 = vshll.u32 %v969_v46, %v326_v13  ;;  %v341_v32 = vshll.u32 %v970_v48, %v326_v13  ;;  %vm265_vm7 = vc.u32 %v1139_v21, %v1142_v22  ;;  %v266_v38 = vadd.s32 1, %v1143_v24 }
  0x6d   : > { %v328_v33 = vshrl.u32 %v966_v40, %v327_v25  ;;  %v330_v34 = vshrl.u32 %v967_v42, %v327_v25  ;;  %v333_v35 = vshrl.u32 %v968_v44, %v327_v25  ;;  %v336_v36 = vshrl.u32 %v969_v46, %v327_v25 }
  0x6e   : > { %v339_v39 = vshrl.u32 %v970_v48, %v327_v25  ;;  %vm345_vm8 = vcmp.lt.s32.totalorder %v325_v12, 2  ;;  %v342_v47 = vshrl.u32 %v971_v56, %v327_v25  ;;  %v267_v49 = vsel %vm265_vm7, %v266_v38, %v1143_v24 }
  0x6f   : > { %v331_v41 = vor.u32 %v330_v34, %v329_v26  ;;  %v334_v43 = vor.u32 %v333_v35, %v332_v28  ;;  %v337_v45 = vor.u32 %v336_v36, %v335_v29  ;;  %vm346_vm9 = vcmp.lt.s32.totalorder %v325_v12, 3 }
  0x70   : > { %v340_v37 = vor.u32 %v339_v39, %v338_v31  ;;  %vm347_vm10 = vcmp.lt.s32.totalorder %v325_v12, 4  ;;  %v268_v50 = vadd.s32 %v267_v49, %v263_v30  ;;  %v343_v40 = vor.u32 %v342_v47, %v341_v32 }
  0x71   : > { %v348_v42 = vsel %vm344_vm6, %v328_v33, %v331_v41  ;;  %v349_v44 = vsel %vm347_vm10, %v337_v45, 2102212464  ;;  %v352_v51 = vsel %vm344_vm6, %v331_v41, %v334_v43  ;;  %v356_v48 = vsel %vm344_vm6, %v334_v43, %v337_v45 }
  0x72   : > { %v350_v46 = vsel %vm346_vm9, %v334_v43, %v349_v44  ;;  %v353_v52 = vsel %vm347_vm10, %v340_v37, 920167782  ;;  %v269_v53 = vadd.s32 536870912, %v268_v50  ;;  %v357_v55 = vsel %vm347_vm10, %v343_v40, 1326507024 }
  0x73   : > { %v354_v54 = vsel %vm346_vm9, %v337_v45, %v353_v52  ;;  %v351_v56 = vsel %vm345_vm8, %v348_v42, %v350_v46  ;;  %v358_v58 = vsel %vm346_vm9, %v340_v37, %v357_v55  ;;  %v264_v18 = vadd.s32 %v1142_v22, %v1139_v21 }
  0x74   : > { %v355_v57 = vsel %vm345_vm8, %v352_v51, %v354_v54  ;;  %v270_v59 = vshrl.u32 %v269_v53, 30  ;;  %v359_v60 = vsel %vm345_vm8, %v356_v48, %v358_v58  ;;  %v367_v4 = vmul.u32 %v360_v17, %v351_v56 }
  0x75   : > { %v1155_v61 = vmul.u32.u64.low %v360_v17, %v355_v57  ;;  %v1156_v62 = vmul.u32.u64.high %v360_v17, %v355_v57, %v1155_v61  ;;  %v1158_v63 = vmul.u32.u64.low %v360_v17, %v359_v60  ;;  %v1159_v0 = vmul.u32.u64.high %v360_v17, %v359_v60, %v1158_v63 }
  0x76   : > { %v271_v2 = vshll.u32 %v270_v59, 30  ;;  %v294_v43 = vsub.s32 4, %v270_v59  ;;  %vm313_vm1 = vcmp.le.f32.partialorder %v312_v27, 0.7853982  ;;  %vm300_vm8 = vweird.f32 %v1117_v19 }
  0x77   : > { %v370_v7 = vadd.s32 1, %v1156_v62  ;;  %vm369_vm11 = vc.u32 %v1159_v0, %v1155_v61  ;;  %v368_v21 = vadd.s32 %v1155_v61, %v1159_v0  ;;  %vm206_vm9 = vcmp.eq.s32.totalorder %v192_v3, 0 }
  0x78   : > { %v272_v5 = vsub.s32 %v268_v50, %v271_v2  ;;  %v295_v40 = vsel %vm210_vm14, %v294_v43, %v270_v59 }
  0x79   : > { %v371_v9 = vsel %vm369_vm11, %v370_v7, %v1156_v62  ;;  %v297_v52 = vsel %vm209_vm15, 0, %v295_v40 }
  0x7a   : > { %v274_v8 = vsub.s32 0, %v272_v5  ;;  %v372_v10 = vadd.s32 %v371_v9, %v367_v4  ;;  %v301_v56 = vadd.s32 3, %v297_v52  ;;  %v509_v20 = vand.u32 3, %v297_v52 }
  0x7c   : > { %v741_v11 = vmin.u32 %v274_v8, %v272_v5  ;;  %v373_v12 = vadd.s32 536870912, %v372_v10  ;;  %v302_v61 = vand.u32 3, %v301_v56  ;;  %vm514_vm3 = vcmp.eq.s32.totalorder %v509_v20, 2 }
  0x7d   : > { %vm511_vm5 = vcmp.eq.s32.totalorder %v509_v20, 0  ;;  %vm510_vm7 = vcmp.lt.s32.totalorder %v509_v20, 2 }
  0x7e   : > { %v276_v13 = vclz %v741_v11  ;;  %v374_v14 = vshrl.u32 %v373_v12, 30  ;;  %vm307_vm2 = vcmp.eq.s32.totalorder %v302_v61, 2  ;;  %vm304_vm4 = vcmp.eq.s32.totalorder %v302_v61, 0 }
  0x7f   : > { %vm303_vm6 = vcmp.lt.s32.totalorder %v302_v61, 2 }
  0x80   : > { %v742_v15 = vadd.s32 4294967294, %v276_v13  ;;  %v375_v16 = vshll.u32 %v374_v14, 30  ;;  %v398_v58 = vsub.s32 4, %v374_v14  ;;  %v153_v13 = vld [vmem:[%s1100_s28] sm:$0xff] }
  0x82   : > { %vm743_vm12 = vcmp.lt.s32.totalorder %v742_v15, 0  ;;  %v376_v17 = vsub.s32 %v372_v10, %v375_v16  ;;  %v399_v62 = vsel %vm314_vm0, %v398_v58, %v374_v14 }
  0x83   : > { %v279_v24 = vsel %vm743_vm12, 0, %v742_v15  ;;  %v401_v4 = vsel %vm313_vm1, 0, %v399_v62 }
  0x84   : > { %v280_v25 = vsub.s32 32, %v279_v24  ;;  %v281_v26 = vshll.u32 %v272_v5, %v279_v24  ;;  %v284_v28 = vsub.s32 4294967266, %v279_v24  ;;  %v378_v29 = vsub.s32 0, %v376_v17 }
  0x85   : > { %v405_v9 = vadd.s32 3, %v401_v4 }
  0x86   : > { %v282_v30 = vshrl.u32 %v264_v18, %v280_v25  ;;  %v285_v31 = vadd.s32 127, %v284_v28  ;;  %v745_v32 = vmin.u32 %v378_v29, %v376_v17 }
  0x87   : > { %v406_v24 = vand.u32 3, %v405_v9 }
  0x88   : > { %v283_v33 = vor.u32 %v282_v30, %v281_v26  ;;  %v286_v34 = vshll.u32 %v285_v31, 23  ;;  %v380_v35 = vclz %v745_v32 }
  0x89   : > { %vm411_vm10 = vcmp.eq.s32.totalorder %v406_v24, 2  ;;  %vm408_vm12 = vcmp.eq.s32.totalorder %v406_v24, 0 }
  0x8a   : > { %v287_v36 = vor.u32 4788187, %v286_v34  ;;  %v290_v38 = vcvt.s32.f32 %v283_v33  ;;  %v746_v39 = vadd.s32 4294967294, %v380_v35  ;;  %v154_v33 = vld [vmem:[%s1100_s28 + $0x8] sm:$0xff] }
  0x8c   : > { %v288_v41 = vand.u32 2147483647, %v287_v36  ;;  %vm747_vm13 = vcmp.lt.s32.totalorder %v746_v39, 0 }
  0x8d   : > { %v383_v45 = vsel %vm747_vm13, 0, %v746_v39 }
  0x8e   : > { %v291_v22 = vmul.f32 %v290_v38, %v288_v41  ;;  %v384_v47 = vsub.s32 32, %v383_v45  ;;  %v385_v49 = vshll.u32 %v376_v17, %v383_v45  ;;  %v388_v37 = vsub.s32 4294967266, %v383_v45 }
  0x8f   : > { %v612_v17 = vand.u32 3, %v401_v4 }
  0x90   : > { %v292_v50 = vxor.u32 2147483648, %v291_v22  ;;  %v386_v42 = vshrl.u32 %v368_v21, %v384_v47  ;;  %v389_v44 = vadd.s32 127, %v388_v37 }
  0x91   : > { %vm617_vm11 = vcmp.eq.s32.totalorder %v612_v17, 2  ;;  %vm614_vm13 = vcmp.eq.s32.totalorder %v612_v17, 0 }
  0x92   : > { %v293_v46 = vsel %vm210_vm14, %v292_v50, %v291_v22  ;;  %v387_v48 = vor.u32 %v386_v42, %v385_v49  ;;  %v390_v53 = vshll.u32 %v389_v44, 23  ;;  %vm407_vm14 = vcmp.lt.s32.totalorder %v406_v24, 2 }
  0x93   : > { %v296_v51 = vsel %vm209_vm15, %v1117_v19, %v293_v46  ;;  %vm613_vm15 = vcmp.lt.s32.totalorder %v612_v17, 2 }
  0x94   : > { %843 = vcosq.f32 %v296_v51  ;;  %v391_v54 = vor.u32 4788187, %v390_v53  ;;  %v394_v55 = vcvt.s32.f32 %v387_v48 }
  0x95   : > { %845 = vsinq.f32 %v296_v51 }
  0x96   : > { %v392_v57 = vand.u32 2147483647, %v391_v54 }
  0x98   : > { %v395_v60 = vmul.f32 %v394_v55, %v392_v57 }
  0x9a   : > { %v396_v59 = vxor.u32 2147483648, %v395_v60 }
  0x9c   : > { %v397_v63 = vsel %vm314_vm0, %v396_v59, %v395_v60  ;;  %vm404_vm0 = vweird.f32 %v1121_v23 }
  0x9d   : > { %v400_v2 = vsel %vm313_vm1, %v1121_v23, %v397_v63  ;;  %vm207_vm1 = vcmp.eq.s32.totalorder %v1113_v6, 0 }
  0x9e   : > { %v844_v0 = vpop.eup %843  ;;  %847 = vcosq.f32 %v400_v2 }
  0x9f   : > { %v846_v5 = vpop.eup %845  ;;  %v308_v7 = vxor.u32 2147483648, %v844_v0  ;;  %849 = vsinq.f32 %v400_v2 }
  0xa0   : > { %v305_v8 = vxor.u32 2147483648, %v846_v5 }
  0xa1   : > { %v309_v27 = vsel %vm307_vm2, %v308_v7, %v846_v5  ;;  %v516_v10 = vsel %vm514_vm3, %v308_v7, %v846_v5 }
  0xa2   : > { %v306_v11 = vsel %vm304_vm4, %v844_v0, %v305_v8  ;;  %v513_v12 = vsel %vm511_vm5, %v844_v0, %v305_v8 }
  0xa3   : > { %v310_v14 = vsel %vm303_vm6, %v306_v11, %v309_v27  ;;  %v517_v15 = vsel %vm510_vm7, %v513_v12, %v516_v10 }
  0xa4   : > { %v311_v16 = vsel %vm300_vm8, nan, %v310_v14  ;;  %v518_v18 = vsel %vm300_vm8, nan, %v517_v15 }
  0xa5   : > { %v622_v25 = vsel %vm206_vm9, %v311_v16, %v518_v18 }
  0xa6   : > { %v624_v26 = vadd.f32 %v622_v25, %v153_v13 }
  0xa8   : > { %626 = vst [vmem:[%s150_s27] sm:$0xff] %v624_v26  ;;  %v848_v19 = vpop.eup %847 }
  0xa9   : > { %v850_v1 = vpop.eup %849  ;;  %v412_v3 = vxor.u32 2147483648, %v848_v19 }
  0xaa   : > { %v409_v28 = vxor.u32 2147483648, %v850_v1 }
  0xab   : > { %v413_v29 = vsel %vm411_vm10, %v412_v3, %v850_v1  ;;  %v619_v30 = vsel %vm617_vm11, %v412_v3, %v850_v1 }
  0xac   : > { %v410_v31 = vsel %vm408_vm12, %v848_v19, %v409_v28  ;;  %v616_v32 = vsel %vm614_vm13, %v848_v19, %v409_v28 }
  0xad   : > { %v414_v34 = vsel %vm407_vm14, %v410_v31, %v413_v29  ;;  %v620_v35 = vsel %vm613_vm15, %v616_v32, %v619_v30 }
  0xae   : > { %v415_v36 = vsel %vm404_vm0, nan, %v414_v34  ;;  %v621_v38 = vsel %vm404_vm0, nan, %v620_v35 }
  0xaf   : > { %v623_v39 = vsel %vm207_vm1, %v415_v36, %v621_v38 }
  0xb0   : > { %v625_v41 = vadd.f32 %v623_v39, %v154_v33 }
  0xb2   : > { %627 = vst [vmem:[%s150_s27 + $0x8] sm:$0xff] %v625_v41 }
  0xb3   : > { %894 = shalt.err (!%p891_p6)
}
  0xb4   : > { %s895_s16 = scalar_lea.hbm %s1187_s4, 256  ;;  %s899_s23 = scalar_lea.hbm %s1237_s1, 512 }
  0xb5   : > { %p896_p4 = scmp.ne.s32.totalorder %s1187_s4, %s895_s16  ;;  %p900_p1 = scmp.lt.u32.totalorder %s1187_s4, %s1237_s1 }
  0xb6   : > { %p901_p2 = scmp.lt.u32.totalorder %s899_s23, %s895_s16  ;;  %p903_p8 = scmp.lt.u32.totalorder %s895_s16, %s1187_s4 }
  0xb7   : > { %p897_p10 = pnand %p896_p4, %p1246_p9 }
  0xb8   : > { %p902_p5 = por %p901_p2, %p900_p1 }
  0xb9   : > { %p898_p12 = pneg %p897_p10 }
  0xba   : > { %p904_p11 = por %p903_p8, %p902_p5 }
  0xbc   : > { %p905_p0 = pnand %p904_p11, %p898_p12 }
  0xbe   : > { %908 = shalt.err (!%p905_p0)
}
  0xbf   : > { %773 = dma.vmem_to_hbm [thread:$0]  (%p1246_p9), %s1189_s30, 256, %s1187_s4, %s629_s5  }
  0xc0 PF: > { %s657_s26 = sand.u32 1, %s943_s6   ;;  %p1247_p7 = scmp.ne.s32.totalorder %s1242_s21, 0 }
  0xc1   : > { %p1248_p13 = scmp.ge.s32.totalorder %s963_s11, 2  ;;  %s658_s28 = scalar_lea.sflag [#allocation4], %s657_s26 }
  0xc3   : > { %p780_p3 = pnand %p1248_p13, %p1247_p7 }
  0xc5   : > { %938 = dma.done.wait (!%p780_p3), %s658_s28, 256  }
  0xc6   : > { %940 = vsyncadd (!%p780_p3), %s658_s28, 4294967040  ;;  %s17_s11 = sadd.s32 1, %s963_s11   ;;  %s1249_s6 = smov %s947_s7 }
  0xc7   : > { %p14_p6 = scmp.ge.s32.totalorder %s17_s11, 4   ;;  %s1250_s7 = smov %s951_s8 }
  0xc8   : > { %s1251_s8 = smov %s1039_s20  ;;  %s1252_s9 = smov %s959_s10 }
  0xc9   : > { %s1253_s10 = smov %s1255_s14  ;;  %16 = sbr.rel (!%p14_p6) target bundleno = 6 (0x6), region = 69 }
  0xd0   :  { %663 = vsyncpa [#allocation3], 1 }
  0xd1   :  { %665 = vsyncpa [#allocation3 + $0x1], 1 }
  0xd2   :  { %666 = vsyncpa [#allocation4], 1 }
  0xd3   :  { %668 = vsyncpa [#allocation4 + $0x1], 1 }

</bundles_post_ra>
